<compile_context>
chip_gen: v5e
topology: v5e:2x2
jax: 0.10.0
libtpu: 0.0.40
codegen_flags: <defaults>
</compile_context>

<pallas_src>
import functools

import jax
import jax.numpy as jnp
from jax.experimental import pallas as pl
from jax.experimental.pallas import tpu as pltpu

LANE = 128     # vreg lane width
SUBLANE = 8    # f32 sublane count


def _round_up(n, m):
    return (n + m - 1) // m * m


def mlp_policy_kernel(x_ref, w1_ref, b1_ref, wh_ref, bh_ref, out_ref, *, a_dim):
    # fc1 + ReLU : (TB, S) @ (S, Hp) -> (TB, Hp)
    h = jnp.dot(x_ref[...], w1_ref[...], preferred_element_type=jnp.float32)
    h = jnp.maximum(h + b1_ref[...], 0.0)

    # Fused mean|std head: one MXU matmul (TB, Hp) @ (Hp, Np) -> (TB, Np)
    # with mean weights in lanes [0, A) and std weights in lanes [A, 2A).
    z = jnp.dot(h, wh_ref[...], preferred_element_type=jnp.float32) + bh_ref[...]

    # Blend the two activations on a lane-index mask and store one lane-dense
    # 128-wide tile (padded lanes are garbage-but-harmless, sliced off outside).
    lane = jax.lax.broadcasted_iota(jnp.int32, z.shape, 1)
    mean_part = jnp.tanh(z)
    std_part = jnp.maximum(z, 0.0) + jnp.log1p(jnp.exp(-jnp.abs(z))) + 1e-5
    out_ref[...] = jnp.where(lane < a_dim, mean_part, std_part)


def mlp_policy_forward(x, w1, b1, wm, bm, ws, bs, *, block_b=1024):
    """x: (B, state_dim) f32. Weights in (in, out) layout, biases (1, out).

    Returns (mean, std), each (B, action_dim) f32.
    """
    x = x.astype(jnp.float32)
    B, S = x.shape
    H = w1.shape[1]
    A = wm.shape[1]
    Hp = _round_up(H, LANE)            # 100 -> 128
    Np = _round_up(2 * A, LANE)        # fused mean|std output lanes: 8 -> 128

    # --- lane-pad fc1 (zero pad => padded hidden units are exactly 0 after relu)
    w1p = jnp.zeros((S, Hp), jnp.float32).at[:, :H].set(w1.astype(jnp.float32))
    b1p = jnp.zeros((1, Hp), jnp.float32).at[:, :H].set(
        b1.reshape(1, H).astype(jnp.float32))

    # --- fuse mean/std heads into ONE (Hp, Np) weight: mean -> lanes [0, A),
    #     std -> lanes [A, 2A); padded rows/cols are zero (inert).
    wh = jnp.zeros((Hp, Np), jnp.float32)
    wh = wh.at[:H, :A].set(wm.astype(jnp.float32))
    wh = wh.at[:H, A:2 * A].set(ws.astype(jnp.float32))
    bh = jnp.zeros((1, Np), jnp.float32)
    bh = bh.at[:, :A].set(bm.reshape(1, A).astype(jnp.float32))
    bh = bh.at[:, A:2 * A].set(bs.reshape(1, A).astype(jnp.float32))

    # --- batch tiling: big tiles (step-overhead bound below ~1024 rows), but
    #     keep >=2 grid steps when possible so v7x's 2 TCs both get work.
    b_aligned = _round_up(B, SUBLANE)
    if b_aligned <= block_b:
        TB = max(SUBLANE, _round_up(pl.cdiv(b_aligned, 2), SUBLANE))
    else:
        TB = block_b
    Bp = _round_up(b_aligned, TB)
    if Bp != B:
        x = jnp.pad(x, ((0, Bp - B), (0, 0)))
    grid = (Bp // TB,)

    flops = 2 * Bp * S * Hp + 2 * Bp * Hp * Np
    bytes_accessed = 4 * (Bp * S + Bp * Np            # activations in/out
                          + S * Hp + Hp               # fc1 weight + bias
                          + Hp * Np + Np)             # fused head weight + bias
    cost = pl.CostEstimate(flops=flops,
                           transcendentals=3 * Bp * Np,   # tanh + exp + log1p
                           bytes_accessed=bytes_accessed)

    out = pl.pallas_call(
        functools.partial(mlp_policy_kernel, a_dim=A),
        out_shape=jax.ShapeDtypeStruct((Bp, Np), jnp.float32),
        grid_spec=pltpu.PrefetchScalarGridSpec(
            num_scalar_prefetch=0,
            grid=grid,
            in_specs=[
                pl.BlockSpec((TB, S), lambda i: (i, 0)),       # x: tiled by batch
                pl.BlockSpec((S, Hp), lambda i: (0, 0)),       # W1: resident
                pl.BlockSpec((1, Hp), lambda i: (0, 0)),       # b1: resident
                pl.BlockSpec((Hp, Np), lambda i: (0, 0)),      # fused head W: resident
                pl.BlockSpec((1, Np), lambda i: (0, 0)),       # fused head b: resident
            ],
            out_specs=pl.BlockSpec((TB, Np), lambda i: (i, 0)),
        ),
        compiler_params=pltpu.CompilerParams(
            dimension_semantics=("parallel",),                 # shard over 2 TCs on v7x
        ),
        cost_estimate=cost,
    )(x, w1p, b1p, wh, bh)

    # NOTE: callers that can consume the packed (B, 2A) slab directly should
    # slice at the use site to avoid an extra HBM pass; the module contract is
    # (mean, std) so we slice here.
    mean = out[:B, :A]
    std = out[:B, A:2 * A]
    return mean, std


def init_params(key, state_dim, action_dim, hidden=100):
    """Parameter init mirroring the PyTorch module (weights in (in, out) layout).

    fc1.weight     : kaiming_normal_  -> std = sqrt(2 / fan_in)
    fc_mean.weight : xavier_normal_   -> std = sqrt(2 / (fan_in + fan_out))
    fc_std.weight  : xavier_normal_
    biases         : PyTorch Linear default uniform(+-1/sqrt(fan_in))
    """
    k1, k2, k3, k4, k5, k6 = jax.random.split(key, 6)

    w1 = jax.random.normal(k1, (state_dim, hidden), jnp.float32) * jnp.sqrt(2.0 / state_dim)
    b1 = jax.random.uniform(k2, (1, hidden), jnp.float32,
                            -1.0 / jnp.sqrt(state_dim), 1.0 / jnp.sqrt(state_dim))

    xav = jnp.sqrt(2.0 / (hidden + action_dim))
    wm = jax.random.normal(k3, (hidden, action_dim), jnp.float32) * xav
    bm = jax.random.uniform(k4, (1, action_dim), jnp.float32,
                            -1.0 / jnp.sqrt(hidden), 1.0 / jnp.sqrt(hidden))

    ws = jax.random.normal(k5, (hidden, action_dim), jnp.float32) * xav
    bs = jax.random.uniform(k6, (1, action_dim), jnp.float32,
                            -1.0 / jnp.sqrt(hidden), 1.0 / jnp.sqrt(hidden))

    return w1, b1, wm, bm, ws, bs


def _reference_forward(x, w1, b1, wm, bm, ws, bs):
    h = jnp.maximum(x @ w1 + b1, 0.0)
    mean = jnp.tanh(h @ wm + bm)
    std = jax.nn.softplus(h @ ws + bs) + 1e-5
    return mean, std


if __name__ == "__main__":
    key = jax.random.PRNGKey(0)
    state_dim, action_dim, batch = 16, 4, 2

    kx, kp = jax.random.split(key)
    x = jax.random.normal(kx, (batch, state_dim), jnp.float32)
    params = init_params(kp, state_dim, action_dim)

    mean, std = jax.jit(mlp_policy_forward)(x, *params)
    jax.block_until_ready((mean, std))

    # sanity: shapes, std positivity, and agreement with a pure-JAX reference
    assert mean.shape == (batch, action_dim)
    assert std.shape == (batch, action_dim)
    assert bool(jnp.all(std > 0.0))
    assert bool(jnp.all(jnp.abs(mean) <= 1.0))

    ref_mean, ref_std = _reference_forward(x, *params)
    assert bool(jnp.max(jnp.abs(mean - ref_mean)) < 1e-5)
    assert bool(jnp.max(jnp.abs(std - ref_std)) < 1e-5)

    # also exercise a batch large enough to need >1 grid step / padding
    xb = jax.random.normal(kx, (1000, state_dim), jnp.float32)
    mb, sb = jax.jit(mlp_policy_forward)(xb, *params)
    jax.block_until_ready((mb, sb))
    rm, rs = _reference_forward(xb, *params)
    assert bool(jnp.max(jnp.abs(mb - rm)) < 1e-5)
    assert bool(jnp.max(jnp.abs(sb - rs)) < 1e-5)

    print("KERNEL_OK")
</pallas_src>

<mosaic_0001>
module attributes {stable_mosaic.version = 11 : i64} {
  func.func @mlp_policy_kernel(%arg0: i32, %arg1: memref<8x16xf32, #tpu.memory_space<vmem>>, %arg2: memref<16x128xf32, #tpu.memory_space<vmem>>, %arg3: memref<1x128xf32, #tpu.memory_space<vmem>>, %arg4: memref<128x128xf32, #tpu.memory_space<vmem>>, %arg5: memref<1x128xf32, #tpu.memory_space<vmem>>, %arg6: memref<8x128xf32, #tpu.memory_space<vmem>>) attributes {dimension_semantics = [#tpu.dimension_semantics<parallel>], iteration_bounds = array<i64: 1>, scalar_prefetch = 0 : i64, scratch_operands = 0 : i64, tpu.core_type = #tpu.core_type<tc>, window_params = [{transform_indices = @transform_0, window_bounds = array<i64: 8, 16>}, {pipeline_mode = #tpu.pipeline_mode<synchronous>, transform_indices = @transform_1, window_bounds = array<i64: 16, 128>}, {pipeline_mode = #tpu.pipeline_mode<synchronous>, transform_indices = @transform_2, window_bounds = array<i64: 1, 128>}, {pipeline_mode = #tpu.pipeline_mode<synchronous>, transform_indices = @transform_3, window_bounds = array<i64: 128, 128>}, {pipeline_mode = #tpu.pipeline_mode<synchronous>, transform_indices = @transform_4, window_bounds = array<i64: 1, 128>}, {transform_indices = @transform_5, window_bounds = array<i64: 8, 128>}]} {
    %c0 = arith.constant 0 : index
    %c0_0 = arith.constant 0 : index
    %0 = vector.load %arg1[%c0, %c0_0] : memref<8x16xf32, #tpu.memory_space<vmem>>, vector<8x16xf32>
    %c0_1 = arith.constant 0 : index
    %c0_2 = arith.constant 0 : index
    %1 = vector.load %arg2[%c0_1, %c0_2] : memref<16x128xf32, #tpu.memory_space<vmem>>, vector<16x128xf32>
    %cst = arith.constant dense<0.000000e+00> : vector<8x128xf32>
    %2 = tpu.matmul %0, %1, %cst {dimension_numbers = #tpu.dot_dimension_numbers<[1], [0], [0], [1], [0, 0, 1, 1], [], []>} : vector<8x16xf32>, vector<16x128xf32>, vector<8x128xf32> -> vector<8x128xf32>
    %c0_3 = arith.constant 0 : index
    %c0_4 = arith.constant 0 : index
    %3 = vector.load %arg3[%c0_3, %c0_4] : memref<1x128xf32, #tpu.memory_space<vmem>>, vector<1x128xf32>
    %4 = vector.broadcast %3 : vector<1x128xf32> to vector<8x128xf32>
    %5 = arith.addf %2, %4 : vector<8x128xf32>
    %cst_5 = arith.constant 0.000000e+00 : f32
    %6 = vector.broadcast %cst_5 : f32 to vector<8x128xf32>
    %7 = arith.maximumf %5, %6 : vector<8x128xf32>
    %c0_6 = arith.constant 0 : index
    %c0_7 = arith.constant 0 : index
    %8 = vector.load %arg4[%c0_6, %c0_7] : memref<128x128xf32, #tpu.memory_space<vmem>>, vector<128x128xf32>
    %cst_8 = arith.constant dense<0.000000e+00> : vector<8x128xf32>
    %9 = tpu.matmul %7, %8, %cst_8 {dimension_numbers = #tpu.dot_dimension_numbers<[1], [0], [0], [1], [0, 0, 1, 1], [], []>} : vector<8x128xf32>, vector<128x128xf32>, vector<8x128xf32> -> vector<8x128xf32>
    %c0_9 = arith.constant 0 : index
    %c0_10 = arith.constant 0 : index
    %10 = vector.load %arg5[%c0_9, %c0_10] : memref<1x128xf32, #tpu.memory_space<vmem>>, vector<1x128xf32>
    %11 = vector.broadcast %10 : vector<1x128xf32> to vector<8x128xf32>
    %12 = arith.addf %9, %11 : vector<8x128xf32>
    %13 = tpu.iota {dimensions = array<i32: 1>} : vector<8x128xi32>
    %14 = math.tanh %12 : vector<8x128xf32>
    %cst_11 = arith.constant 0.000000e+00 : f32
    %15 = vector.broadcast %cst_11 : f32 to vector<8x128xf32>
    %16 = arith.maximumf %12, %15 : vector<8x128xf32>
    %17 = math.absf %12 : vector<8x128xf32>
    %cst_12 = arith.constant 0.000000e+00 : f32
    %18 = vector.broadcast %cst_12 : f32 to vector<8x128xf32>
    %19 = arith.subf %18, %17 : vector<8x128xf32>
    %20 = math.exp %19 : vector<8x128xf32>
    %21 = math.log1p %20 : vector<8x128xf32>
    %22 = arith.addf %16, %21 : vector<8x128xf32>
    %cst_13 = arith.constant 9.99999974E-6 : f32
    %23 = vector.broadcast %cst_13 : f32 to vector<8x128xf32>
    %24 = arith.addf %22, %23 : vector<8x128xf32>
    %c4_i32 = arith.constant 4 : i32
    %25 = vector.broadcast %c4_i32 : i32 to vector<8x128xi32>
    %26 = arith.cmpi slt, %13, %25 : vector<8x128xi32>
    %27 = arith.select %26, %14, %24 : vector<8x128xi1>, vector<8x128xf32>
    %c0_14 = arith.constant 0 : index
    %c0_15 = arith.constant 0 : index
    %28 = vector.load %arg6[%c0_14, %c0_15] : memref<8x128xf32, #tpu.memory_space<vmem>>, vector<8x128xf32>
    tpu.vector_store %arg6[%c0_14, %c0_15], %27 {strides = array<i32>} : memref<8x128xf32, #tpu.memory_space<vmem>>, vector<8x128xf32>,
    return
  }
  func.func @transform_0(%arg0: i32) -> (i32, i32) {
    %c0_i32 = arith.constant 0 : i32
    %c0_i32_0 = arith.constant 0 : i32
    return %arg0, %c0_i32 : i32, i32
  }
  func.func @transform_1(%arg0: i32) -> (i32, i32) {
    %c0_i32 = arith.constant 0 : i32
    %c0_i32_0 = arith.constant 0 : i32
    %c0_i32_1 = arith.constant 0 : i32
    return %c0_i32, %c0_i32_0 : i32, i32
  }
  func.func @transform_2(%arg0: i32) -> (i32, i32) {
    %c0_i32 = arith.constant 0 : i32
    %c0_i32_0 = arith.constant 0 : i32
    %c0_i32_1 = arith.constant 0 : i32
    return %c0_i32, %c0_i32_0 : i32, i32
  }
  func.func @transform_3(%arg0: i32) -> (i32, i32) {
    %c0_i32 = arith.constant 0 : i32
    %c0_i32_0 = arith.constant 0 : i32
    %c0_i32_1 = arith.constant 0 : i32
    return %c0_i32, %c0_i32_0 : i32, i32
  }
  func.func @transform_4(%arg0: i32) -> (i32, i32) {
    %c0_i32 = arith.constant 0 : i32
    %c0_i32_0 = arith.constant 0 : i32
    %c0_i32_1 = arith.constant 0 : i32
    return %c0_i32, %c0_i32_0 : i32, i32
  }
  func.func @transform_5(%arg0: i32) -> (i32, i32) {
    %c0_i32 = arith.constant 0 : i32
    %c0_i32_0 = arith.constant 0 : i32
    return %arg0, %c0_i32 : i32, i32
  }
}

</mosaic_0001>

<bundles_post_ra>
// kernel: mlp_policy_forward.1
= control target key start
LH: loop header
LB: loop body
LE: loop exit
PB: predicated region body
PF: predicated region fallthrough
CT: control target
= control target key end

     0   :  { %vm27_vm0 = vcmask 130048   ;;  %v92_v32 = vlaneseq  ;;  %s223_s1 = inlined_call_operand.vmem [shape: f32[16,128], index: 1, kind: input, shape index: {}]   ;;  %s224_s0 = inlined_call_operand.vmem [shape: f32[8,16], index: 0, kind: input, shape index: {}]   ;;  %s225_s3 = inlined_call_operand.vmem [shape: f32[128,128], index: 3, kind: input, shape index: {}]   ;;  %s226_s2 = inlined_call_operand.vmem [shape: f32[1,128], index: 2, kind: input, shape index: {}]   ;;  %s227_s4 = inlined_call_operand.vmem [shape: f32[1,128], index: 4, kind: input, shape index: {}]   ;;  %s228_s5 = inlined_call_operand.vmem [shape: f32[8,128], index: 5, kind: output, shape index: {}]  }
   0x1   :  { %v22_v0 = vld [vmem:[%s223_s1 + $0x8] sm:$0xff]  ;;  %v21_v1 = vld [vmem:[%s223_s1] sm:$0xff]  ;;  %v67_v3 = vld [vmem:[%s225_s3 + $0x78] sm:$0xff] }
   0x2   :  { %45 = vmatpush.msra.mxu0 %v22_v0  ;;  %v20_v2 = vld [vmem:[%s224_s0] sm:$0xff]  ;;  %v66_v4 = vld [vmem:[%s225_s3 + $0x70] sm:$0xff]  ;;  %72 = vmatpush.msra.mxu1 %v67_v3  ;;  %v65_v5 = vld [vmem:[%s225_s3 + $0x68] sm:$0xff]  ;;  %v93_v36 = vand.u32 127, %v92_v32 }
   0x3   :  { %v64_v6 = vld [vmem:[%s225_s3 + $0x60] sm:$0xff]  ;;  %v63_v7 = vld [vmem:[%s225_s3 + $0x58] sm:$0xff]  ;;  %v62_v8 = vld [vmem:[%s225_s3 + $0x50] sm:$0xff] }
   0x4   :  { %46 = vmatpush.msra.mxu0 %v21_v1  ;;  %73 = vmatpush.msra.mxu1 %v66_v4  ;;  %v61_v9 = vld [vmem:[%s225_s3 + $0x48] sm:$0xff]  ;;  %v60_v10 = vld [vmem:[%s225_s3 + $0x40] sm:$0xff]  ;;  %v59_v11 = vld [vmem:[%s225_s3 + $0x38] sm:$0xff]  ;;  %vm111_vm2 = vcmp.lt.s32.totalorder %v93_v36, 4 }
   0x5   :  { %118 = vmatmul.msk.f32.vlgmr.msra.gmra.mxu0 %vm27_vm0, %v20_v2  ;;  %v58_v12 = vld [vmem:[%s225_s3 + $0x30] sm:$0xff]  ;;  %v57_v13 = vld [vmem:[%s225_s3 + $0x28] sm:$0xff]  ;;  %v56_v14 = vld [vmem:[%s225_s3 + $0x20] sm:$0xff] }
   0x6   :  { %74 = vmatpush.msra.mxu1 %v65_v5  ;;  %v55_v15 = vld [vmem:[%s225_s3 + $0x18] sm:$0xff]  ;;  %v54_v16 = vld [vmem:[%s225_s3 + $0x10] sm:$0xff]  ;;  %v53_v17 = vld [vmem:[%s225_s3 + $0x8] sm:$0xff] }
   0x7   :  { %v52_v18 = vld [vmem:[%s225_s3] sm:$0xff] }
   0x8   :  { %75 = vmatpush.msra.mxu1 %v64_v6  ;;  %v119_v19 = vld [vmem:[%s226_s2] ss:$0 sm:$0xff] }
   0x9   :  { %v120_v23 = vld [vmem:[%s227_s4] ss:$0 sm:$0xff] }
   0xa   :  { %76 = vmatpush.msra.mxu1 %v63_v7 }
   0xc   :  { %77 = vmatpush.msra.mxu1 %v62_v8 }
   0xe   :  { %78 = vmatpush.msra.mxu1 %v61_v9 }
  0x10   :  { %79 = vmatpush.msra.mxu1 %v60_v10 }
  0x12   :  { %80 = vmatpush.msra.mxu1 %v59_v11 }
  0x14   :  { %81 = vmatpush.msra.mxu1 %v58_v12 }
  0x16   :  { %82 = vmatpush.msra.mxu1 %v57_v13 }
  0x18   :  { %83 = vmatpush.msra.mxu1 %v56_v14 }
  0x1a   :  { %84 = vmatpush.msra.mxu1 %v55_v15 }
  0x1c   :  { %85 = vmatpush.msra.mxu1 %v54_v16 }
  0x1e   :  { %86 = vmatpush.msra.mxu1 %v53_v17 }
  0x20   :  { %87 = vmatpush.msra.mxu1 %v52_v18 }
  0x82   :  { %v48_v20 = vpop.f32.mrf.mxu0 }
  0x83   :  { %v49_v21 = vadd.f32 %v119_v19, %v48_v20 }
  0x85   :  { %v51_v22 = vmax.f32 %v49_v21, 0.0 }
  0x87   :  { %88 = vmatmul.f32.vlgmr.msra.gmra.mxu1 %v51_v22 }
 0x104   :  { %v89_v24 = vpop.f32.mrf.mxu1 }
 0x105   :  { %v90_v25 = vadd.f32 %v120_v23, %v89_v24 }
 0x107   :  { %v96_v26 = vand.u32 2147483647, %v90_v25  ;;  %v95_v39 = vmax.f32 %v90_v25, 0.0 }
 0x109   :  { %v97_v27 = vsub.f32 0.0, %v96_v26 }
 0x10b   :  { %v98_v28 = vmul.f32 1.442695, %v97_v27 }
 0x10d   :  { %121 = vpow2.f32 %v98_v28 }
 0x113   :  { %v122_v29 = vpop.eup %121 }
 0x114   :  { %v100_v30 = vadd.f32 1.0, %v122_v29  ;;  %v103_v31 = vmul.f32 -0.5, %v122_v29  ;;  %v106_v34 = vand.u32 2147483647, %v122_v29 }
 0x116   :  { %123 = vlog2.f32 %v100_v30  ;;  %v104_v33 = vadd.f32 1.0, %v103_v31  ;;  %vm107_vm1 = vcmp.lt.f32.partialorder %v106_v34, 0.0004427343 }
 0x117   :  { %125 = vtanh.f32 %v90_v25 }
 0x118   :  { %v105_v38 = vmul.f32 %v122_v29, %v104_v33 }
 0x11c   :  { %v124_v35 = vpop.eup %123 }
 0x11d   :  { %v102_v37 = vmul.f32 0.6931472, %v124_v35  ;;  %v126_v43 = vpop.eup %125 }
 0x11f   :  { %v108_v40 = vsel %vm107_vm1, %v105_v38, %v102_v37 }
 0x120   :  { %v109_v41 = vadd.f32 %v108_v40, %v95_v39 }
 0x122   :  { %v110_v42 = vadd.f32 1e-05, %v109_v41 }
 0x124   :  { %v112_v44 = vsel %vm111_vm2, %v126_v43, %v110_v42 }
 0x125   :  { %113 = vst [vmem:[%s228_s5] sm:$0xff] %v112_v44 }

</bundles_post_ra>
